<compile_context>
chip_gen: v7x
topology: tpu7x:2x2x1
jax: 0.10.0
libtpu: 0.0.40
codegen_flags: <defaults>
</compile_context>

<pallas_src>
import functools

import jax
import jax.numpy as jnp
from jax.experimental import pallas as pl
from jax.experimental.pallas import tpu as pltpu

_LANE = 128     # lane width: last dims padded to a multiple of this
_SUBLANE = 16   # bf16 sublane packing: row tiles kept a multiple of this


def _round_up(n: int, m: int) -> int:
    return ((n + m - 1) // m) * m


def _vmem_capacity_bytes() -> int:
    """Per-core VMEM capacity; conservative 64 MiB (v7x per-TensorCore) if query fails."""
    try:
        cap = int(pltpu.get_tpu_info().vmem_capacity_bytes)
        if cap > 0:
            return cap
    except Exception:
        pass
    return 64 << 20


def _pick_filter_tiling(F: int):
    """Pad F only to a lane multiple; pick the filter tile minimizing padding waste."""
    f128 = _round_up(F, _LANE)
    best_fp, best_tf = None, None
    for cand in (512, 384, 256, 128):
        if cand > f128:
            continue
        fp = _round_up(f128, cand)
        if best_fp is None or fp < best_fp:
            best_fp, best_tf = fp, cand
    return best_fp, best_tf


def _pick_row_tile(rows: int, target: int) -> int:
    """Row tile: multiple of the bf16 sublane pack; prefer >= 2 tiles (v7x has 2 TCs)."""
    tm = max(_SUBLANE, _round_up(min(target, _round_up(rows, _SUBLANE)), _SUBLANE))
    if _round_up(rows, tm) // tm < 2:
        half = _round_up((rows + 1) // 2, _SUBLANE)
        if _SUBLANE <= half < tm:
            tm = half
    return tm


def _streamed_vmem_bytes(tm, Hp, tf, out_itemsize, apply_mask):
    return (2 * tm * Hp * 2                 # x tiles (bf16, double-buffered)
            + 2 * 2 * Hp * tf * 2           # W1^T + W2^T filter tiles (bf16, 2-buffered)
            + 2 * 8 * (tf + Hp) * 4         # bias tiles (sublane-padded)
            + 2 * tm * Hp * out_itemsize    # out tiles (double-buffered)
            + tm * Hp * 4                   # f32 accumulator scratch
            + (2 * tm * _LANE * 4 if apply_mask else 0))


def _resident_vmem_bytes(tm, Hp, Fp, tf, out_itemsize, apply_mask):
    return (2 * 2 * Hp * Fp * 2             # W1^T + W2^T full (bf16, default 2-buffer alloc)
            + 2 * 8 * (Fp + Hp) * 4         # biases (sublane-padded)
            + 2 * tm * Hp * 2               # x tiles (bf16, double-buffered)
            + 2 * tm * Hp * out_itemsize    # out tiles (double-buffered)
            + tm * Hp * 4                   # f32 accumulator value
            + tm * tf * 6                   # per-chunk h (f32) + its bf16 copy
            + (2 * tm * _LANE * 4 if apply_mask else 0))


# ------------------------------- kernels ------------------------------------------------


def _ffn_kernel_resident(x_ref, w1t_ref, b1_ref, w2t_ref, b2_ref, *rest,
                         apply_mask, tf):
    # Weights are VMEM-resident (constant index_map -> DMA'd from HBM once, reused by
    # every row tile).  Walk the filter axis in static tf-wide chunks so the f32 working
    # set stays (tm, Hp) + (tm, tf) regardless of filter_size.
    if apply_mask:
        mask_ref, out_ref = rest
    else:
        (out_ref,) = rest

    x = x_ref[...]
    n_chunks = w1t_ref.shape[1] // tf
    acc = jnp.zeros(out_ref.shape, jnp.float32)
    for k in range(n_chunks):   # static unroll; n_chunks is bounded by the VMEM gate
        sl = slice(k * tf, (k + 1) * tf)
        h = jnp.dot(x, w1t_ref[:, sl], preferred_element_type=jnp.float32)
        h = h + b1_ref[:, sl]
        # Reference forward applies no activation here; dropout is train-only (no-op).
        acc = acc + jnp.dot(h.astype(w2t_ref.dtype), w2t_ref[sl, :],
                            preferred_element_type=jnp.float32)

    y = acc + b2_ref[...]
    if apply_mask:
        y = y * mask_ref[...]          # padded rows -> exact zeros
    out_ref[...] = y.astype(out_ref.dtype)


def _ffn_kernel_streamed(x_ref, w1t_ref, b1_ref, w2t_ref, b2_ref, *rest, apply_mask):
    # Fallback when the weights do not fit VMEM: filter tiles streamed on grid axis 1,
    # f32 accumulator in scratch.
    if apply_mask:
        mask_ref, out_ref, acc_ref = rest
    else:
        out_ref, acc_ref = rest

    j = pl.program_id(1)

    h = jnp.dot(x_ref[...], w1t_ref[...], preferred_element_type=jnp.float32)
    h = h + b1_ref[...]
    # Reference forward applies no activation here; dropout is train-only (no-op).
    partial = jnp.dot(h.astype(w2t_ref.dtype), w2t_ref[...],
                      preferred_element_type=jnp.float32)

    @pl.when(j == 0)
    def _first():                      # write first partial directly: no zero-fill + add
        acc_ref[...] = partial

    @pl.when(j > 0)
    def _accumulate():
        acc_ref[...] += partial

    @pl.when(j == pl.num_programs(1) - 1)
    def _finalize():
        y = acc_ref[...] + b2_ref[...]
        if apply_mask:
            y = y * mask_ref[...]      # padded rows -> exact zeros
        out_ref[...] = y.astype(out_ref.dtype)


# ------------------------------- host-side wrappers -------------------------------------


def prepare_ffn_params(params):
    """One-time weight preprocessing: transpose, pad to lane multiples, cast to bf16.

    Call once and reuse the result across feed_forward_network calls so the transpose /
    pad / cast HBM traffic is not paid on every forward.
    """
    w1, b1, w2, b2 = params["w1"], params["b1"], params["w2"], params["b2"]
    F, H = w1.shape
    assert w2.shape == (H, F) and b1.shape == (F,) and b2.shape == (H,)
    Hp = _round_up(H, _LANE)
    Fp, tf = _pick_filter_tiling(F)
    return {
        "w1t": jnp.pad(w1.T, ((0, Hp - H), (0, Fp - F))).astype(jnp.bfloat16),  # (Hp, Fp)
        "w2t": jnp.pad(w2.T, ((0, Fp - F), (0, Hp - H))).astype(jnp.bfloat16),  # (Fp, Hp)
        "b1": jnp.pad(b1.astype(jnp.float32), (0, Fp - F)).reshape(1, Fp),
        "b2": jnp.pad(b2.astype(jnp.float32), (0, Hp - H)).reshape(1, Hp),
        "H": H, "F": F, "Hp": Hp, "Fp": Fp, "tf": tf,
    }


def feed_forward_network(x, params, padding=None, *, allow_pad=True,
                         row_tile=None, force_streamed=False):
    """x: [B, L, H]; padding: optional [B, L] (nonzero == kept token). Returns [B, L, H].

    `params` may be the raw {"w1","b1","w2","b2"} dict or a prepare_ffn_params() result
    (preferred: prepare once and reuse, so weight preprocessing is not re-done per call).
    """
    prep = params if "w1t" in params else prepare_ffn_params(params)
    H, Hp, Fp, tf = prep["H"], prep["Hp"], prep["Fp"], prep["tf"]
    w1t, b1r, w2t, b2r = prep["w1t"], prep["b1"], prep["w2t"], prep["b2"]

    B, L, Hx = x.shape
    assert Hx == H, (Hx, H)
    if not allow_pad:
        padding = None
    apply_mask = padding is not None
    # TODO(synk): train=True relu_dropout (nn.functional.dropout) is not implemented;
    # this kernel is the eval (train=False) forward, where dropout is a no-op.

    out_dtype = x.dtype
    out_itemsize = jnp.dtype(out_dtype).itemsize
    rows = B * L

    # ~45 MiB budget on v7x (64 MiB / TensorCore), ~90 MiB on v5e/v6e (128 MiB).
    budget = int(_vmem_capacity_bytes() * 0.7)

    # ---- choose resident-weight vs streamed design -------------------------------------
    tm_res = _pick_row_tile(rows, 256 if row_tile is None else row_tile)
    resident_need = _resident_vmem_bytes(tm_res, Hp, Fp, tf, out_itemsize, apply_mask)
    use_resident = (not force_streamed) and (resident_need + (8 << 20) <= budget)

    if use_resident:
        tm = tm_res
        rows_p = _round_up(rows, tm)
        grid = (rows_p // tm,)
        kernel = functools.partial(_ffn_kernel_resident, apply_mask=apply_mask, tf=tf)
        in_specs = [
            pl.BlockSpec((tm, Hp), lambda i: (i, 0)),   # x row tile
            pl.BlockSpec((Hp, Fp), lambda i: (0, 0)),   # W1^T, resident (fetched once)
            pl.BlockSpec((1, Fp), lambda i: (0, 0)),    # b1, resident
            pl.BlockSpec((Fp, Hp), lambda i: (0, 0)),   # W2^T, resident (fetched once)
            pl.BlockSpec((1, Hp), lambda i: (0, 0)),    # b2, resident
        ]
        mask_spec = pl.BlockSpec((tm, 1), lambda i: (i, 0))
        out_spec = pl.BlockSpec((tm, Hp), lambda i: (i, 0))
        scratch_shapes = []
        dim_sem = ("parallel",)
        vmem_need = resident_need
        weight_reads = 1                         # weights read from HBM exactly once
    else:
        target = 1024 if row_tile is None else row_tile
        tm = _pick_row_tile(rows, target)
        while (_streamed_vmem_bytes(tm, Hp, tf, out_itemsize, apply_mask) + (8 << 20)
               > budget and tm > _SUBLANE):
            target = max(_SUBLANE, target // 2)
            new_tm = _pick_row_tile(rows, target)
            if new_tm >= tm:
                break
            tm = new_tm
        rows_p = _round_up(rows, tm)
        grid = (rows_p // tm, Fp // tf)
        kernel = functools.partial(_ffn_kernel_streamed, apply_mask=apply_mask)
        in_specs = [
            pl.BlockSpec((tm, Hp), lambda i, j: (i, 0)),   # x tile (constant along F)
            pl.BlockSpec((Hp, tf), lambda i, j: (0, j)),   # W1^T filter tile (streamed)
            pl.BlockSpec((1, tf), lambda i, j: (0, j)),    # b1 tile
            pl.BlockSpec((tf, Hp), lambda i, j: (j, 0)),   # W2^T filter tile (streamed)
            pl.BlockSpec((1, Hp), lambda i, j: (0, 0)),    # b2 (tiny, constant)
        ]
        mask_spec = pl.BlockSpec((tm, 1), lambda i, j: (i, 0))
        out_spec = pl.BlockSpec((tm, Hp), lambda i, j: (i, 0))
        scratch_shapes = [pltpu.VMEM((tm, Hp), jnp.float32)]
        dim_sem = ("parallel", "arbitrary")      # rows across cores, filter sequential
        vmem_need = _streamed_vmem_bytes(tm, Hp, tf, out_itemsize, apply_mask)
        weight_reads = rows_p // tm              # weights re-streamed once per row tile

    # ---- wrapper glue: reshape, zero-pad, cast x to bf16; optional row mask ------------
    x2 = jnp.pad(x.reshape(rows, H), ((0, rows_p - rows), (0, Hp - H))).astype(jnp.bfloat16)
    operands = [x2, w1t, b1r, w2t, b2r]
    if apply_mask:
        mask = (padding.reshape(rows) != 0).astype(jnp.float32)
        mask = jnp.pad(mask, (0, rows_p - rows)).reshape(rows_p, 1)
        in_specs.append(mask_spec)
        operands.append(mask)

    vmem_limit = min(max(32 << 20, int(vmem_need) + (8 << 20)), budget)
    vmem_limit = max(vmem_limit, int(vmem_need) + (2 << 20))

    bytes_accessed = (rows_p * Hp * 2
                      + weight_reads * (2 * Hp * Fp * 2 + Fp * 4)
                      + Hp * 4
                      + rows_p * Hp * out_itemsize
                      + (rows_p * 4 if apply_mask else 0))
    cost = pl.CostEstimate(flops=2 * 2 * rows_p * Hp * Fp, transcendentals=0,
                           bytes_accessed=int(bytes_accessed))

    out2 = pl.pallas_call(
        kernel,
        out_shape=jax.ShapeDtypeStruct((rows_p, Hp), out_dtype),
        grid_spec=pltpu.PrefetchScalarGridSpec(
            num_scalar_prefetch=0,
            grid=grid,
            in_specs=in_specs,
            out_specs=out_spec,
            scratch_shapes=scratch_shapes,
        ),
        compiler_params=pltpu.CompilerParams(
            dimension_semantics=dim_sem,
            vmem_limit_bytes=int(vmem_limit),
        ),
        cost_estimate=cost,
    )(*operands)

    return out2[:rows, :H].reshape(B, L, H)


def init_params(key, hidden_size, filter_size):
    k1, k2, k3, k4 = jax.random.split(key, 4)
    # nn.Linear(hidden, filter): weight (filter, hidden), bias (filter,)
    w1 = jax.random.normal(k1, (filter_size, hidden_size), jnp.float32) * 0.02
    b1 = jax.random.normal(k2, (filter_size,), jnp.float32) * 0.02
    # nn.Linear(filter, hidden): weight (hidden, filter), bias (hidden,)
    w2 = jax.random.normal(k3, (hidden_size, filter_size), jnp.float32) * 0.02
    b2 = jax.random.normal(k4, (hidden_size,), jnp.float32) * 0.02
    return {"w1": w1, "b1": b1, "w2": w2, "b2": b2}


def _ffn_ref(x, params, padding=None):
    y = x @ params["w1"].T + params["b1"]
    y = y @ params["w2"].T + params["b2"]
    if padding is not None:
        y = y * (padding != 0).astype(x.dtype)[..., None]
    return y


if __name__ == "__main__":
    # --- small demo shapes (bf16 MXU compute -> compare to f32 ref at loose tolerance) ---
    hidden_size, filter_size, batch, length = 32, 64, 2, 8

    key = jax.random.PRNGKey(0)
    kx, kp, kpad = jax.random.split(key, 3)
    params = init_params(kp, hidden_size, filter_size)
    prep = prepare_ffn_params(params)      # one-time weight preprocessing, reused below
    x = jax.random.normal(kx, (batch, length, hidden_size), jnp.float32)
    # reference convention: nonzero entries are the NON-pad (kept) tokens
    padding = (jax.random.uniform(kpad, (batch, length)) > 0.25).astype(jnp.float32)

    out = jax.block_until_ready(feed_forward_network(x, prep, padding=padding))
    ref = _ffn_ref(x, params, padding)
    assert out.shape == (batch, length, hidden_size)
    assert jnp.allclose(out, ref, atol=2e-2, rtol=2e-2)
    # padded rows must be exact zeros (index_add round-trip semantics)
    assert bool(jnp.all(jnp.where((padding == 0)[..., None], out == 0, True)))

    # --- no-padding path (mask stream elided) ---
    out_np = jax.block_until_ready(feed_forward_network(x, prep, padding=None))
    assert jnp.allclose(out_np, _ffn_ref(x, params, None), atol=2e-2, rtol=2e-2)

    # --- larger case: multi row-tile grid, multi-chunk filter loop, tail padding --------
    B2, L2, H2, F2 = 2, 160, 192, 1200
    k1, k2, k3 = jax.random.split(jax.random.PRNGKey(1), 3)
    params2 = init_params(k1, H2, F2)
    prep2 = prepare_ffn_params(params2)
    x2 = jax.random.normal(k2, (B2, L2, H2), jnp.float32)
    pad2 = (jax.random.uniform(k3, (B2, L2)) > 0.3).astype(jnp.float32)
    ref2 = _ffn_ref(x2, params2, pad2)

    out2 = jax.block_until_ready(feed_forward_network(x2, prep2, padding=pad2))
    assert jnp.allclose(out2, ref2, atol=2e-2, rtol=2e-2)
    assert bool(jnp.all(jnp.where((pad2 == 0)[..., None], out2 == 0, True)))

    # --- streamed fallback path (used when weights exceed VMEM); exercised explicitly ---
    out2s = jax.block_until_ready(
        feed_forward_network(x2, prep2, padding=pad2, force_streamed=True))
    assert jnp.allclose(out2s, ref2, atol=2e-2, rtol=2e-2)
    assert bool(jnp.all(jnp.where((pad2 == 0)[..., None], out2s == 0, True)))

    print("KERNEL_OK")
</pallas_src>

<mosaic_0001>
module attributes {stable_mosaic.version = 11 : i64} {
  func.func @_ffn_kernel_resident(%arg0: i32, %arg1: memref<16x128xbf16, #tpu.memory_space<vmem>>, %arg2: memref<128x128xbf16, #tpu.memory_space<vmem>>, %arg3: memref<1x128xf32, #tpu.memory_space<vmem>>, %arg4: memref<128x128xbf16, #tpu.memory_space<vmem>>, %arg5: memref<1x128xf32, #tpu.memory_space<vmem>>, %arg6: memref<16x1xf32, #tpu.memory_space<vmem>>, %arg7: memref<16x128xf32, #tpu.memory_space<vmem>>) attributes {dimension_semantics = [#tpu.dimension_semantics<parallel>], iteration_bounds = array<i64: 1>, scalar_prefetch = 0 : i64, scratch_operands = 0 : i64, tpu.core_type = #tpu.core_type<tc>, window_params = [{transform_indices = @transform_0, window_bounds = array<i64: 16, 128>}, {pipeline_mode = #tpu.pipeline_mode<synchronous>, transform_indices = @transform_1, window_bounds = array<i64: 128, 128>}, {pipeline_mode = #tpu.pipeline_mode<synchronous>, transform_indices = @transform_2, window_bounds = array<i64: 1, 128>}, {pipeline_mode = #tpu.pipeline_mode<synchronous>, transform_indices = @transform_3, window_bounds = array<i64: 128, 128>}, {pipeline_mode = #tpu.pipeline_mode<synchronous>, transform_indices = @transform_4, window_bounds = array<i64: 1, 128>}, {transform_indices = @transform_5, window_bounds = array<i64: 16, 1>}, {transform_indices = @transform_6, window_bounds = array<i64: 16, 128>}]} {
    %c0 = arith.constant 0 : index
    %c0_0 = arith.constant 0 : index
    %0 = vector.load %arg1[%c0, %c0_0] : memref<16x128xbf16, #tpu.memory_space<vmem>>, vector<16x128xbf16>
    %cst = arith.constant 0.000000e+00 : f32
    %1 = vector.broadcast %cst : f32 to vector<16x128xf32>
    %c0_1 = arith.constant 0 : index
    %c0_2 = arith.constant 0 : index
    %2 = vector.load %arg2[%c0_1, %c0_2] : memref<128x128xbf16, #tpu.memory_space<vmem>>, vector<128x128xbf16>
    %cst_3 = arith.constant dense<0.000000e+00> : vector<16x128xf32>
    %3 = tpu.matmul %0, %2, %cst_3 {dimension_numbers = #tpu.dot_dimension_numbers<[1], [0], [0], [1], [0, 0, 1, 1], [], []>} : vector<16x128xbf16>, vector<128x128xbf16>, vector<16x128xf32> -> vector<16x128xf32>
    %c0_4 = arith.constant 0 : index
    %c0_5 = arith.constant 0 : index
    %4 = vector.load %arg3[%c0_4, %c0_5] : memref<1x128xf32, #tpu.memory_space<vmem>>, vector<1x128xf32>
    %5 = vector.broadcast %4 : vector<1x128xf32> to vector<16x128xf32>
    %6 = arith.addf %3, %5 : vector<16x128xf32>
    %7 = arith.truncf %6 : vector<16x128xf32> to vector<16x128xbf16>
    %c0_6 = arith.constant 0 : index
    %c0_7 = arith.constant 0 : index
    %8 = vector.load %arg4[%c0_6, %c0_7] : memref<128x128xbf16, #tpu.memory_space<vmem>>, vector<128x128xbf16>
    %cst_8 = arith.constant dense<0.000000e+00> : vector<16x128xf32>
    %9 = tpu.matmul %7, %8, %cst_8 {dimension_numbers = #tpu.dot_dimension_numbers<[1], [0], [0], [1], [0, 0, 1, 1], [], []>} : vector<16x128xbf16>, vector<128x128xbf16>, vector<16x128xf32> -> vector<16x128xf32>
    %10 = arith.addf %1, %9 : vector<16x128xf32>
    %c0_9 = arith.constant 0 : index
    %c0_10 = arith.constant 0 : index
    %11 = vector.load %arg5[%c0_9, %c0_10] : memref<1x128xf32, #tpu.memory_space<vmem>>, vector<1x128xf32>
    %12 = vector.broadcast %11 : vector<1x128xf32> to vector<16x128xf32>
    %13 = arith.addf %10, %12 : vector<16x128xf32>
    %c0_11 = arith.constant 0 : index
    %c0_12 = arith.constant 0 : index
    %14 = vector.load %arg6[%c0_11, %c0_12] : memref<16x1xf32, #tpu.memory_space<vmem>>, vector<16x1xf32>
    %15 = vector.broadcast %14 : vector<16x1xf32> to vector<16x128xf32>
    %16 = arith.mulf %13, %15 : vector<16x128xf32>
    %c0_13 = arith.constant 0 : index
    %c0_14 = arith.constant 0 : index
    %17 = vector.load %arg7[%c0_13, %c0_14] : memref<16x128xf32, #tpu.memory_space<vmem>>, vector<16x128xf32>
    tpu.vector_store %arg7[%c0_13, %c0_14], %16 {strides = array<i32>} : memref<16x128xf32, #tpu.memory_space<vmem>>, vector<16x128xf32>,
    return
  }
  func.func @transform_0(%arg0: i32) -> (i32, i32) {
    %c0_i32 = arith.constant 0 : i32
    %c0_i32_0 = arith.constant 0 : i32
    return %arg0, %c0_i32 : i32, i32
  }
  func.func @transform_1(%arg0: i32) -> (i32, i32) {
    %c0_i32 = arith.constant 0 : i32
    %c0_i32_0 = arith.constant 0 : i32
    %c0_i32_1 = arith.constant 0 : i32
    return %c0_i32, %c0_i32_0 : i32, i32
  }
  func.func @transform_2(%arg0: i32) -> (i32, i32) {
    %c0_i32 = arith.constant 0 : i32
    %c0_i32_0 = arith.constant 0 : i32
    %c0_i32_1 = arith.constant 0 : i32
    return %c0_i32, %c0_i32_0 : i32, i32
  }
  func.func @transform_3(%arg0: i32) -> (i32, i32) {
    %c0_i32 = arith.constant 0 : i32
    %c0_i32_0 = arith.constant 0 : i32
    %c0_i32_1 = arith.constant 0 : i32
    return %c0_i32, %c0_i32_0 : i32, i32
  }
  func.func @transform_4(%arg0: i32) -> (i32, i32) {
    %c0_i32 = arith.constant 0 : i32
    %c0_i32_0 = arith.constant 0 : i32
    %c0_i32_1 = arith.constant 0 : i32
    return %c0_i32, %c0_i32_0 : i32, i32
  }
  func.func @transform_5(%arg0: i32) -> (i32, i32) {
    %c0_i32 = arith.constant 0 : i32
    %c0_i32_0 = arith.constant 0 : i32
    return %arg0, %c0_i32 : i32, i32
  }
  func.func @transform_6(%arg0: i32) -> (i32, i32) {
    %c0_i32 = arith.constant 0 : i32
    %c0_i32_0 = arith.constant 0 : i32
    return %arg0, %c0_i32 : i32, i32
  }
}

</mosaic_0001>

<bundles_post_ra>
// kernel: tpu_custom_call.1
= control target key start
LH: loop header
LB: loop body
LE: loop exit
PB: predicated region body
PF: predicated region fallthrough
CT: control target
= control target key end

     0   :  { %11 = vsyncpa [#allocation3], 0  ;;  %s593_s0 = inlined_call_operand.vmem [shape: bf16[16,128], index: 0, kind: input, shape index: {}]   ;;  %s594_s1 = inlined_call_operand.hbm [shape: bf16[128,128], index: 1, kind: input, shape index: {}]   ;;  %s595_s2 = inlined_call_operand.vmem [shape: f32[1,128], index: 2, kind: input, shape index: {}]   ;;  %s596_s3 = inlined_call_operand.hbm [shape: bf16[128,128], index: 3, kind: input, shape index: {}]   ;;  %s597_s4 = inlined_call_operand.vmem [shape: f32[1,128], index: 4, kind: input, shape index: {}]   ;;  %s598_s5 = inlined_call_operand.vmem [shape: f32[16,1], index: 5, kind: input, shape index: {}]   ;;  %s599_s6 = inlined_call_operand.hbm [shape: f32[16,128], index: 6, kind: output, shape index: {}]  }
   0x1   :  { %12 = vsyncpa [#allocation6], 0 }
   0x2   :  { %13 = vsyncpa [#allocation4], 0  ;;  %s497_s21 = smov [#allocation2]   ;;  %s425_s25 = scalar_lea.hbm %s594_s1, 1024 }
   0x3   :  { %s21_s22 = sshll.u32 %s497_s21, 4  ;;  %p426_p0 = scmp.ne.s32.totalorder %s594_s1, %s425_s25  ;;  %s22_s22 = int_to_ptr.vmem [resolvable:$true] %s21_s22 }
   0x4   :  { %p429_p1 = scmp.lt.u32.totalorder %s425_s25, %s594_s1 }
   0x6   :  { %p431_p2 = pnand %p429_p1, %p426_p0 }
   0x8   :  { %434 = shalt.err (!%p431_p2)
}
   0x9   :  { %s435_s30 = scalar_lea.vmem %s22_s22, 1024  ;;  %p440_p4 = scmp.lt.s32.totalorder %s22_s22, %s22_s22 }
   0xa   :  { %p436_p3 = scmp.ne.s32.totalorder %s22_s22, %s435_s30  ;;  %p441_p5 = scmp.lt.s32.totalorder %s435_s30, %s435_s30 }
   0xc   :  { %p442_p6 = por %p441_p5, %p440_p4 }
   0xe   :  { %p443_p7 = pnand %p442_p6, %p436_p3 }
  0x10   :  { %446 = shalt.err (!%p443_p7)
}
  0x11   :  { %s498_s7 = smov 64   ;;  %s499_s8 = smov 4  }
  0x12   :  { %27 = dma.hbm_to_vmem [thread:$0]  %s594_s1, 1024, %s22_s22, [#allocation3], %s498_s7, %s498_s7, %s499_s8  }
  0x13   :  { %s500_s11 = smov [#allocation5]   ;;  %s447_s15 = scalar_lea.hbm %s596_s3, 1024 }
  0x14   :  { %s35_s12 = sshll.u32 %s500_s11, 4  ;;  %p448_p8 = scmp.ne.s32.totalorder %s596_s3, %s447_s15  ;;  %s36_s12 = int_to_ptr.vmem [resolvable:$true] %s35_s12 }
  0x15   :  { %p451_p9 = scmp.lt.u32.totalorder %s447_s15, %s596_s3 }
  0x17   :  { %p453_p10 = pnand %p451_p9, %p448_p8 }
  0x19   :  { %456 = shalt.err (!%p453_p10)
}
  0x1a   :  { %s457_s20 = scalar_lea.vmem %s36_s12, 1024  ;;  %p462_p12 = scmp.lt.s32.totalorder %s36_s12, %s36_s12 }
  0x1b   :  { %p458_p11 = scmp.ne.s32.totalorder %s36_s12, %s457_s20  ;;  %p463_p13 = scmp.lt.s32.totalorder %s457_s20, %s457_s20 }
  0x1d   :  { %p464_p0 = por %p463_p13, %p462_p12 }
  0x1f   :  { %p465_p1 = pnand %p464_p0, %p458_p11 }
  0x21   :  { %468 = shalt.err (!%p465_p1)
}
  0x22   :  { %41 = dma.hbm_to_vmem [thread:$0]  %s596_s3, 1024, %s36_s12, [#allocation6], %s498_s7, %s498_s7, %s499_s8  }
  0x23   :  { %491 = dma.done.wait [#allocation3], 1024  }
  0x24   :  { %492 = vsyncadd [#allocation3], 4294966272 }
  0x25   :  { %493 = dma.done.wait [#allocation6], 1024  }
  0x26   :  { %494 = vsyncadd [#allocation6], 4294966272  ;;  %v501_v0 = vmov 0.0   ;;  %vm502_vm0 = vmmov 0   ;;  %v408_v1 = vld [vmem:[#allocation2] sm:$0xff]   ;;  %v409_v2 = vld [vmem:[#allocation2 + $0x8] sm:$0xff]  }
  0x27   :  { %357 = vmatprep.subr.bf16.mxu0 %v501_v0  ;;  %373 = vmatprep.mubr.msk.bf16.mxu0 %vm502_vm0, %v501_v0  ;;  %v410_v3 = vld [vmem:[#allocation2 + $0x10] sm:$0xff]   ;;  %v417_v4 = vld [vmem:[#allocation5] sm:$0xff]   ;;  %v411_v5 = vld [vmem:[#allocation2 + $0x18] sm:$0xff]   ;;  %v503_v19 = vmov 0  }
  0x28   :  { %377 = vmatprep.subr.bf16.mxu1 %v501_v0  ;;  %393 = vmatprep.mubr.msk.bf16.mxu1 %vm502_vm0, %v501_v0  ;;  %v418_v6 = vld [vmem:[#allocation5 + $0x8] sm:$0xff]   ;;  %v412_v7 = vld [vmem:[#allocation2 + $0x20] sm:$0xff]   ;;  %v419_v8 = vld [vmem:[#allocation5 + $0x10] sm:$0xff]  }
  0x29   :  { %358 = vmatpush3.bf16.msra.mxu0 %v408_v1  ;;  %378 = vmatpush3.bf16.msra.mxu1 %v417_v4  ;;  %v413_v9 = vld [vmem:[#allocation2 + $0x28] sm:$0xff]   ;;  %v420_v10 = vld [vmem:[#allocation5 + $0x18] sm:$0xff]   ;;  %v414_v11 = vld [vmem:[#allocation2 + $0x30] sm:$0xff]  }
  0x2a   :  { %359 = vmatprep.subr.bf16.mxu0 %v501_v0  ;;  %379 = vmatprep.subr.bf16.mxu1 %v501_v0  ;;  %v421_v12 = vld [vmem:[#allocation5 + $0x20] sm:$0xff]   ;;  %v415_v13 = vld [vmem:[#allocation2 + $0x38] sm:$0xff]   ;;  %v422_v14 = vld [vmem:[#allocation5 + $0x28] sm:$0xff]  }
  0x2b   :  { %v416_v15 = vld [vmem:[%s593_s0] sm:$0xff]   ;;  %v423_v16 = vld [vmem:[#allocation5 + $0x30] sm:$0xff]   ;;  %v424_v17 = vld [vmem:[#allocation5 + $0x38] sm:$0xff]   ;;  %407 = vset.pattern.permute.xlu0 %v503_v19 }
  0x2c   :  { %v286_v18 = vld [vmem:[%s598_s5] sm:$0xff]  ;;  %v287_v20 = vld [vmem:[%s598_s5 + $0x8] sm:$0xff]  ;;  %s504_s5 = smov [#allocation7]  }
  0x2d   :  { %360 = vmatpush3.bf16.msra.mxu0 %v409_v2  ;;  %380 = vmatpush3.bf16.msra.mxu1 %v418_v6  ;;  %v320_v21 = vld [vmem:[%s595_s2] ss:$0 sm:$0xff]  ;;  %s307_s30 = sshll.u32 %s504_s5, 4  ;;  %s308_s30 = int_to_ptr.vmem [resolvable:$true] %s307_s30 }
  0x2e   :  { %361 = vmatprep.subr.bf16.mxu0 %v501_v0  ;;  %381 = vmatprep.subr.bf16.mxu1 %v501_v0  ;;  %v330_v30 = vld [vmem:[%s597_s4] ss:$0 sm:$0xff]  ;;  %s469_s2 = scalar_lea.vmem %s308_s30, 256  ;;  %p474_p3 = scmp.lt.s32.totalorder %s308_s30, %s308_s30 }
  0x2f   :  { %290 = vperm.xlu0 %407, %v286_v18   ;;  %p470_p2 = scmp.ne.s32.totalorder %s308_s30, %s469_s2  ;;  %p475_p4 = scmp.lt.s32.totalorder %s469_s2, %s469_s2 }
  0x31   :  { %362 = vmatpush3.bf16.msra.mxu0 %v410_v3  ;;  %382 = vmatpush3.bf16.msra.mxu1 %v419_v8  ;;  %p476_p5 = por %p475_p4, %p474_p3 }
  0x32   :  { %363 = vmatprep.subr.bf16.mxu0 %v501_v0  ;;  %383 = vmatprep.subr.bf16.mxu1 %v501_v0 }
  0x33   :  { %295 = vperm.xlu0 %407, %v287_v20   ;;  %p477_p6 = pnand %p476_p5, %p470_p2 }
  0x35   :  { %364 = vmatpush3.bf16.msra.mxu0 %v411_v5  ;;  %384 = vmatpush3.bf16.msra.mxu1 %v420_v10 }
  0x36   :  { %365 = vmatprep.subr.bf16.mxu0 %v501_v0  ;;  %385 = vmatprep.subr.bf16.mxu1 %v501_v0 }
  0x39   :  { %366 = vmatpush3.bf16.msra.mxu0 %v412_v7  ;;  %386 = vmatpush3.bf16.msra.mxu1 %v421_v12 }
  0x3a   :  { %367 = vmatprep.subr.bf16.mxu0 %v501_v0  ;;  %387 = vmatprep.subr.bf16.mxu1 %v501_v0 }
  0x3d   :  { %368 = vmatpush3.bf16.msra.mxu0 %v413_v9  ;;  %388 = vmatpush3.bf16.msra.mxu1 %v422_v14 }
  0x3e   :  { %369 = vmatprep.subr.bf16.mxu0 %v501_v0  ;;  %389 = vmatprep.subr.bf16.mxu1 %v501_v0 }
  0x41   :  { %370 = vmatpush3.bf16.msra.mxu0 %v414_v11  ;;  %390 = vmatpush3.bf16.msra.mxu1 %v423_v16 }
  0x42   :  { %371 = vmatprep.subr.bf16.mxu0 %v501_v0  ;;  %391 = vmatprep.subr.bf16.mxu1 %v501_v0 }
  0x45   :  { %372 = vmatpush3.bf16.msra.mxu0 %v415_v13  ;;  %392 = vmatpush3.bf16.msra.mxu1 %v424_v17 }
  0x48   :  { %374 = vmatmul.mubr.bf16.vlgmr.msra.gmra.mrb[0].mxu0 %v416_v15 }
  0xae   :  { %v291_v29 = vpop.permute.xlu0 %290 }
  0xb2   :  { %v296_v38 = vpop.permute.xlu0 %295 }
 0x11b   :  { %v166_v22 = vpop.f32.mrb[0].mxu0 }
 0x11c   :  { %v375_v23 = vpop.f32.mrb[1].mxu0  ;;  %v167_v25 = vadd.f32 %v320_v21, %v166_v22 }
 0x11d   :  { %v169_v24 = vpop.f32.mrb[2].mxu0 }
 0x11e   :  { %v170_v26 = vadd.f32 %v320_v21, %v169_v24  ;;  %v376_v27 = vpop.f32.mrb[3].mxu0 }
 0x120   :  { %v173_v28 = vpack.c.bf16 %v170_v26, %v167_v25 }
 0x122   :  { %394 = vmatmul.mubr.bf16.vlgmr.msra.gmra.mrb[0].mxu1 %v173_v28 }
 0x1f5   :  { %v279_v31 = vpop.f32.mrb[0].mxu1 }
 0x1f6   :  { %v280_v32 = vadd.f32 %v330_v30, %v279_v31  ;;  %v395_v33 = vpop.f32.mrb[1].mxu1 }
 0x1f7   :  { %v282_v34 = vpop.f32.mrb[2].mxu1 }
 0x1f8   :  { %v298_v35 = vmul.f32 %v291_v29, %v280_v32  ;;  %v283_v36 = vadd.f32 %v330_v30, %v282_v34  ;;  %v396_v37 = vpop.f32.mrb[3].mxu1 }
 0x1fa   :  { %300 = vst [vmem:[#allocation7] sm:$0xff] %v298_v35  ;;  %v299_v39 = vmul.f32 %v296_v38, %v283_v36 }
 0x1fc   :  { %301 = vst [vmem:[#allocation7 + $0x8] sm:$0xff] %v299_v39 }
 0x1fd   :  { %480 = shalt.err (!%p477_p6)
}
 0x1fe   :  { %s481_s8 = scalar_lea.hbm %s599_s6, 256 }
 0x1ff   :  { %p482_p7 = scmp.ne.s32.totalorder %s599_s6, %s481_s8  ;;  %p485_p8 = scmp.lt.u32.totalorder %s481_s8, %s599_s6 }
 0x201   :  { %p487_p9 = pnand %p485_p8, %p482_p7 }
 0x203   :  { %490 = shalt.err (!%p487_p9)
}
 0x204   :  { %s505_s13 = smov 128   ;;  %s506_s14 = smov 8  }
 0x205   :  { %313 = dma.vmem_to_hbm [thread:$0]  %s308_s30, 256, %s599_s6, [#allocation4], %s505_s13, %s505_s13, %s506_s14  }
 0x206   :  { %495 = dma.done.wait [#allocation4], 256  }
 0x207   :  { %496 = vsyncadd [#allocation4], 4294967040 }
 0x208   :  { %317 = vsyncpa [#allocation3], 1 }
 0x209   :  { %318 = vsyncpa [#allocation6], 1 }
 0x20a   :  { %319 = vsyncpa [#allocation4], 1 }

</bundles_post_ra>
